<compile_context>
chip_gen: v6e
topology: v6e:2x2x1
jax: 0.10.0
libtpu: 0.0.40
codegen_flags: <defaults>
</compile_context>

<pallas_src>
import functools

import jax
import jax.numpy as jnp
from jax.experimental import pallas as pl
from jax.experimental.pallas import tpu as pltpu

LANES = 128


def _cdiv(a, b):
    return -(-a // b)


def _round_up(a, b):
    return _cdiv(a, b) * b


def _bce_kernel(x_ref, y_ref, o_ref, acc_ref, *, smoothing, acc_rows, rows_last):
    i = pl.program_id(0)
    last = pl.num_programs(0) - 1

    @pl.when(i == 0)
    def _():
        acc_ref[...] = jnp.zeros_like(acc_ref)

    x = x_ref[...].astype(jnp.float32)        # logits, cast in-kernel (native dtype DMA)
    y = y_ref[...].astype(jnp.float32)        # labels, cast in-kernel (torch's .float())
    if smoothing > 0.0:
        y = jnp.abs(y - jnp.float32(smoothing))

    # Numerically-stable BCE with logits (PyTorch's formulation):
    #   max(x, 0) - x*y + log(1 + exp(-|x|))
    loss = jnp.maximum(x, 0.0) - x * y + jnp.log1p(jnp.exp(-jnp.abs(x)))

    tile_rows = x_ref.shape[0]

    def fold(v):
        # (tile_rows, 128) -> (acc_rows, 128): pure VPU vreg adds, acc_rows/8 independent
        # accumulation chains (ILP); single cross-lane reduce happens once at the end.
        return v.reshape(-1, acc_rows, LANES).sum(axis=0)

    if rows_last == tile_rows:
        # Every block is full -> no masking anywhere.
        acc_ref[...] += fold(loss)
    else:
        # Only the last grid step can be partial; mask it there and nowhere else.
        @pl.when(i < last)
        def _():
            acc_ref[...] += fold(loss)

        @pl.when(i == last)
        def _():
            row = jax.lax.broadcasted_iota(jnp.int32, (tile_rows, LANES), 0)
            acc_ref[...] += fold(jnp.where(row < rows_last, loss, 0.0))

    @pl.when(i == last)
    def _():
        # One XLU cross-lane reduce; mean is finalized in the wrapper.
        o_ref[0, 0] = jnp.sum(acc_ref[...])


def bce_loss_with_smoothing(preds, label, smoothing=0.0, tile_m=8192, min_tile_m=512):
    """Mean BCE-with-logits loss with optional label smoothing (Pallas TPU kernel)."""
    assert smoothing < 1.0
    assert preds.shape == label.shape

    total = preds.size
    x = preds.reshape(-1)                     # native dtype (bf16 halves HBM traffic)
    y = label.reshape(-1)                     # native dtype (int/bool/bf16/f32); cast in kernel

    rem = total % LANES
    bulk = total - rem

    # ---- tail (< 128 elements): tiny plain-JAX computation, negligible traffic --------
    if rem:
        xt = x[bulk:].astype(jnp.float32)
        yt = y[bulk:].astype(jnp.float32)
        if smoothing > 0.0:
            yt = jnp.abs(yt - jnp.float32(smoothing))
        tail_sum = jnp.sum(
            jnp.maximum(xt, 0.0) - xt * yt + jnp.log1p(jnp.exp(-jnp.abs(xt)))
        )
    else:
        tail_sum = jnp.float32(0.0)

    m_rows = bulk // LANES
    if m_rows == 0:                           # degenerate tiny input: tail covers it all
        return tail_sum / jnp.float32(total)

    if rem:
        # Non-lane-aligned element count: one slice copy of the bulk is unavoidable here;
        # lane-aligned inputs (the common case for NCHW tensors) take the zero-copy path.
        xb, yb = x[:bulk], y[:bulk]
    else:
        xb, yb = x, y                         # pure-metadata reshape, zero-copy
    x2 = xb.reshape(m_rows, LANES)
    y2 = yb.reshape(m_rows, LANES)

    # Largest tile that fits; floor against accidental tiny tiles; multiple of 8 rows.
    tile_req = max(int(tile_m), int(min_tile_m))
    tile_m_eff = _round_up(min(tile_req, _round_up(m_rows, 8)), 8)
    steps = _cdiv(m_rows, tile_m_eff)
    rows_last = m_rows - (steps - 1) * tile_m_eff   # valid rows in the last (maybe partial) tile

    # Widest accumulator that evenly folds the tile (32 preferred -> 4 independent chains).
    acc_rows = 32 if tile_m_eff % 32 == 0 else (16 if tile_m_eff % 16 == 0 else 8)

    kernel = functools.partial(
        _bce_kernel,
        smoothing=float(smoothing),
        acc_rows=int(acc_rows),
        rows_last=int(rows_last),
    )

    partial_sum = pl.pallas_call(
        kernel,
        out_shape=jax.ShapeDtypeStruct((1, 1), jnp.float32),
        grid_spec=pltpu.PrefetchScalarGridSpec(
            num_scalar_prefetch=0,
            grid=(steps,),
            in_specs=[
                pl.BlockSpec((tile_m_eff, LANES), lambda i: (i, 0)),
                pl.BlockSpec((tile_m_eff, LANES), lambda i: (i, 0)),
            ],
            out_specs=pl.BlockSpec(
                (1, 1), lambda i: (0, 0), memory_space=pltpu.SMEM
            ),
            scratch_shapes=[pltpu.VMEM((acc_rows, LANES), jnp.float32)],
        ),
        compiler_params=pltpu.CompilerParams(
            dimension_semantics=("arbitrary",),
            vmem_limit_bytes=32 * 1024 * 1024,   # fits 8192-row f32 blocks even on v5e
        ),
    )(x2, y2)[0, 0]

    return (partial_sum + tail_sum) / jnp.float32(total)


def _reference(preds, label, smoothing):
    y = label.astype(jnp.float32)
    if smoothing > 0.0:
        y = jnp.abs(y - smoothing)
    x = preds.astype(jnp.float32)
    loss = jnp.maximum(x, 0.0) - x * y + jnp.log1p(jnp.exp(-jnp.abs(x)))
    return jnp.mean(loss)


if __name__ == "__main__":
    key = jax.random.PRNGKey(0)
    k1, k2, k3, k4, k5, k6 = jax.random.split(key, 6)

    # Test 1: small NCHW segmentation-style inputs, smoothing on (single full tile).
    preds = jax.random.normal(k1, (2, 4, 16, 16), dtype=jnp.float32)
    label = (jax.random.uniform(k2, (2, 4, 16, 16)) > 0.5).astype(jnp.float32)
    out = jax.block_until_ready(bce_loss_with_smoothing(preds, label, smoothing=0.1))
    ref = _reference(preds, label, 0.1)
    assert jnp.allclose(out, ref, rtol=1e-5, atol=1e-5), (out, ref)

    # Test 2: bf16 logits, element count not a multiple of 128
    #         (exercises the tail peel AND the in-kernel partial-tile row mask).
    preds2 = jax.random.normal(k3, (2, 3, 23, 37), dtype=jnp.bfloat16)
    label2 = (jax.random.uniform(k4, (2, 3, 23, 37)) > 0.5).astype(jnp.float32)
    out2 = jax.block_until_ready(bce_loss_with_smoothing(preds2, label2, smoothing=0.0))
    ref2 = _reference(preds2, label2, 0.0)
    assert jnp.allclose(out2, ref2, rtol=1e-5, atol=1e-5), (out2, ref2)

    # Test 3: integer labels kept native (cast happens in-kernel), small tile to exercise
    #         the multi-step reduction grid with a partial last tile.
    preds3 = jax.random.normal(k5, (2, 4, 30, 32), dtype=jnp.float32)
    label3 = (jax.random.uniform(k6, (2, 4, 30, 32)) > 0.5).astype(jnp.int32)
    out3 = jax.block_until_ready(
        bce_loss_with_smoothing(preds3, label3, smoothing=0.2, tile_m=16, min_tile_m=8)
    )
    ref3 = _reference(preds3, label3, 0.2)
    assert jnp.allclose(out3, ref3, rtol=1e-5, atol=1e-5), (out3, ref3)

    print("KERNEL_OK")
</pallas_src>

<mosaic_0001>
module attributes {stable_mosaic.version = 11 : i64} {
  func.func @_bce_kernel(%arg0: i32, %arg1: memref<16x128xf32, #tpu.memory_space<vmem>>, %arg2: memref<16x128xf32, #tpu.memory_space<vmem>>, %arg3: memref<1x1xf32, #tpu.memory_space<smem>>, %arg4: memref<16x128xf32, #tpu.memory_space<vmem>>) attributes {dimension_semantics = [#tpu.dimension_semantics<arbitrary>], iteration_bounds = array<i64: 1>, scalar_prefetch = 0 : i64, scratch_operands = 1 : i64, tpu.core_type = #tpu.core_type<tc>, window_params = [{transform_indices = @transform_0, window_bounds = array<i64: 16, 128>}, {transform_indices = @transform_1, window_bounds = array<i64: 16, 128>}, {transform_indices = @transform_2, window_bounds = array<i64: 1, 1>}]} {
    %c0_i32 = arith.constant 0 : i32
    %0 = arith.cmpi eq, %arg0, %c0_i32 : i32
    %1 = arith.extui %0 : i1 to i32
    %c0_i32_0 = arith.constant 0 : i32
    %2 = arith.cmpi ne, %1, %c0_i32_0 : i32
    scf.if %2 {
      %cst_13 = arith.constant 0.000000e+00 : f32
      %26 = vector.broadcast %cst_13 : f32 to vector<16x128xf32>
      %c0_14 = arith.constant 0 : index
      %c0_15 = arith.constant 0 : index
      %27 = vector.load %arg4[%c0_14, %c0_15] : memref<16x128xf32, #tpu.memory_space<vmem>>, vector<16x128xf32>
      tpu.vector_store %arg4[%c0_14, %c0_15], %26 {strides = array<i32>} : memref<16x128xf32, #tpu.memory_space<vmem>>, vector<16x128xf32>,
    } else {
    }
    %c0 = arith.constant 0 : index
    %c0_1 = arith.constant 0 : index
    %3 = vector.load %arg1[%c0, %c0_1] : memref<16x128xf32, #tpu.memory_space<vmem>>, vector<16x128xf32>
    %c0_2 = arith.constant 0 : index
    %c0_3 = arith.constant 0 : index
    %4 = vector.load %arg2[%c0_2, %c0_3] : memref<16x128xf32, #tpu.memory_space<vmem>>, vector<16x128xf32>
    %cst = arith.constant 1.000000e-01 : f32
    %5 = vector.broadcast %cst : f32 to vector<16x128xf32>
    %6 = arith.subf %4, %5 : vector<16x128xf32>
    %7 = math.absf %6 : vector<16x128xf32>
    %cst_4 = arith.constant 0.000000e+00 : f32
    %8 = vector.broadcast %cst_4 : f32 to vector<16x128xf32>
    %9 = arith.maximumf %3, %8 : vector<16x128xf32>
    %10 = arith.mulf %3, %7 : vector<16x128xf32>
    %11 = arith.subf %9, %10 : vector<16x128xf32>
    %12 = math.absf %3 : vector<16x128xf32>
    %cst_5 = arith.constant 0.000000e+00 : f32
    %13 = vector.broadcast %cst_5 : f32 to vector<16x128xf32>
    %14 = arith.subf %13, %12 : vector<16x128xf32>
    %15 = math.exp %14 : vector<16x128xf32>
    %16 = math.log1p %15 : vector<16x128xf32>
    %17 = arith.addf %11, %16 : vector<16x128xf32>
    %c0_6 = arith.constant 0 : index
    %c0_7 = arith.constant 0 : index
    %18 = vector.load %arg4[%c0_6, %c0_7] : memref<16x128xf32, #tpu.memory_space<vmem>>, vector<16x128xf32>
    %19 = vector.shape_cast %17 : vector<16x128xf32> to vector<1x16x128xf32>
    %cst_8 = arith.constant dense<0.000000e+00> : vector<16x128xf32>
    %20 = vector.multi_reduction <add>, %19, %cst_8 [0] : vector<1x16x128xf32> to vector<16x128xf32>
    %21 = arith.addf %18, %20 : vector<16x128xf32>
    %c0_9 = arith.constant 0 : index
    %c0_10 = arith.constant 0 : index
    %22 = vector.load %arg4[%c0_9, %c0_10] : memref<16x128xf32, #tpu.memory_space<vmem>>, vector<16x128xf32>
    tpu.vector_store %arg4[%c0_9, %c0_10], %21 {strides = array<i32>} : memref<16x128xf32, #tpu.memory_space<vmem>>, vector<16x128xf32>,
    %c0_i32_11 = arith.constant 0 : i32
    %23 = arith.cmpi eq, %arg0, %c0_i32_11 : i32
    %24 = arith.extui %23 : i1 to i32
    %c0_i32_12 = arith.constant 0 : i32
    %25 = arith.cmpi ne, %24, %c0_i32_12 : i32
    scf.if %25 {
      %c0_13 = arith.constant 0 : index
      %c0_14 = arith.constant 0 : index
      %26 = vector.load %arg4[%c0_13, %c0_14] : memref<16x128xf32, #tpu.memory_space<vmem>>, vector<16x128xf32>
      %27 = vector.shape_cast %26 : vector<16x128xf32> to vector<1x16x128xf32>
      %cst_15 = arith.constant dense<0.000000e+00> : vector<1xf32>
      %28 = vector.multi_reduction <add>, %27, %cst_15 [1, 2] : vector<1x16x128xf32> to vector<1xf32>
      %29 = vector.shape_cast %28 : vector<1xf32> to vector<1x1x1xf32>
      %30 = vector.extract %29[0, 0, 0] : f32 from vector<1x1x1xf32>
      %c0_16 = arith.constant 0 : index
      %c0_17 = arith.constant 0 : index
      %31 = memref.load %arg3[%c0_16, %c0_17] : memref<1x1xf32, #tpu.memory_space<smem>>
      memref.store %30, %arg3[%c0_16, %c0_17] : memref<1x1xf32, #tpu.memory_space<smem>>
    } else {
    }
    return
  }
  func.func @transform_0(%arg0: i32) -> (i32, i32) {
    %c0_i32 = arith.constant 0 : i32
    %c0_i32_0 = arith.constant 0 : i32
    return %arg0, %c0_i32 : i32, i32
  }
  func.func @transform_1(%arg0: i32) -> (i32, i32) {
    %c0_i32 = arith.constant 0 : i32
    %c0_i32_0 = arith.constant 0 : i32
    return %arg0, %c0_i32 : i32, i32
  }
  func.func @transform_2(%arg0: i32) -> (i32, i32) {
    %c0_i32 = arith.constant 0 : i32
    %c0_i32_0 = arith.constant 0 : i32
    %c0_i32_1 = arith.constant 0 : i32
    return %c0_i32, %c0_i32_0 : i32, i32
  }
}

</mosaic_0001>

<bundles_post_ra>
// kernel: tpu_custom_call.1
= control target key start
LH: loop header
LB: loop body
LE: loop exit
PB: predicated region body
PF: predicated region fallthrough
CT: control target
= control target key end

     0   :  { %7 = vsyncpa [#allocation4], 0  ;;  %s228_s0 = inlined_call_operand.hbm [shape: f32[16,128], index: 0, kind: input, shape index: {}]   ;;  %s229_s1 = inlined_call_operand.hbm [shape: f32[16,128], index: 1, kind: input, shape index: {}]   ;;  %s230_s2 = inlined_call_operand.hbm [shape: f32[1,1], index: 2, kind: output, shape index: {}]  }
   0x1   :  { %8 = vsyncpa [#allocation7], 0 }
   0x2   :  { %9 = vsyncpa [#allocation5], 0  ;;  %s199_s9 = smov [#allocation3]  }
   0x3   :  { %s15_s10 = sshll.u32 %s199_s9, 4  ;;  %s16_s10 = int_to_ptr.vmem [resolvable:$true] %s15_s10 }
   0x4   :  { %s153_s11 = scalar_lea.vmem %s16_s10, 256  ;;  %p158_p1 = scmp.lt.s32.totalorder %s16_s10, %s16_s10 }
   0x5   :  { %p154_p0 = scmp.ne.s32.totalorder %s16_s10, %s153_s11  ;;  %p159_p2 = scmp.lt.s32.totalorder %s153_s11, %s153_s11 }
   0x7   :  { %p160_p3 = por %p159_p2, %p158_p1 }
   0x9   :  { %p161_p4 = pnand %p160_p3, %p154_p0 }
   0xb   :  { %164 = shalt.err (!%p161_p4)
}
   0xc   :  { %s200_s12 = smov 128   ;;  %s201_s13 = smov 8  }
   0xd   :  { %21 = dma.hbm_to_vmem [thread:$0]  %s228_s0, 256, %s16_s10, [#allocation4], %s200_s12, %s200_s12, %s201_s13  }
   0xe   :  { %s202_s16 = smov [#allocation6]  }
   0xf   :  { %s27_s17 = sshll.u32 %s202_s16, 4  ;;  %s28_s17 = int_to_ptr.vmem [resolvable:$true] %s27_s17 }
  0x10   :  { %s173_s18 = scalar_lea.vmem %s28_s17, 256  ;;  %p178_p6 = scmp.lt.s32.totalorder %s28_s17, %s28_s17 }
  0x11   :  { %p174_p5 = scmp.ne.s32.totalorder %s28_s17, %s173_s18  ;;  %p179_p7 = scmp.lt.s32.totalorder %s173_s18, %s173_s18 }
  0x13   :  { %p180_p8 = por %p179_p7, %p178_p6 }
  0x15   :  { %p181_p9 = pnand %p180_p8, %p174_p5 }
  0x17   :  { %184 = shalt.err (!%p181_p9)
}
  0x18   :  { %33 = dma.hbm_to_vmem [thread:$0]  %s229_s1, 256, %s28_s17, [#allocation7], %s200_s12, %s200_s12, %s201_s13  }
  0x19   :  { %193 = dma.done.wait [#allocation4], 256  }
  0x1a   :  { %194 = vsyncadd [#allocation4], 4294967040 }
  0x1b   :  { %195 = dma.done.wait [#allocation7], 256  }
  0x1c   :  { %196 = vsyncadd [#allocation7], 4294967040  ;;  %v46_v0 = vld [vmem:[#allocation3] sm:$0xff]  ;;  %v47_v1 = vld [vmem:[#allocation3 + $0x8] sm:$0xff]  ;;  %s203_s1 = smov [#allocation8]  }
  0x1d   :  { %v60_v2 = vand.u32 2147483647, %v46_v0  ;;  %v61_v3 = vand.u32 2147483647, %v47_v1  ;;  %v48_v10 = vld [vmem:[#allocation6] sm:$0xff]  ;;  %v49_v12 = vld [vmem:[#allocation6 + $0x8] sm:$0xff] }
  0x1e   :  { %v128_v14 = vadd.f32 -0.1, %v48_v10  ;;  %v129_v15 = vadd.f32 -0.1, %v49_v12  ;;  %v54_v21 = vmax.f32 %v46_v0, 0.0  ;;  %v55_v25 = vmax.f32 %v47_v1, 0.0 }
  0x1f   :  { %v62_v4 = vsub.f32 0.0, %v60_v2  ;;  %v63_v5 = vsub.f32 0.0, %v61_v3 }
  0x20   :  { %v52_v17 = vand.u32 2147483647, %v128_v14  ;;  %v53_v19 = vand.u32 2147483647, %v129_v15 }
  0x21   :  { %v64_v6 = vmul.f32 1.442695, %v62_v4  ;;  %v66_v7 = vmul.f32 1.442695, %v63_v5 }
  0x22   :  { %v56_v22 = vmul.f32 %v52_v17, %v46_v0  ;;  %v57_v26 = vmul.f32 %v53_v19, %v47_v1 }
  0x23   :  { %137 = vpow2.f32 %v64_v6 }
  0x24   :  { %139 = vpow2.f32 %v66_v7  ;;  %v58_v30 = vsub.f32 %v54_v21, %v56_v22  ;;  %v59_v33 = vsub.f32 %v55_v25, %v57_v26 }
  0x30   :  { %v138_v8 = vpop.eup %137 }
  0x31   :  { %v140_v9 = vpop.eup %139  ;;  %v68_v11 = vadd.f32 1.0, %v138_v8  ;;  %v71_v16 = vmul.f32 -0.5, %v138_v8  ;;  %v74_v23 = vand.u32 2147483647, %v138_v8 }
  0x32   :  { %v77_v13 = vadd.f32 1.0, %v140_v9  ;;  %v80_v18 = vmul.f32 -0.5, %v140_v9  ;;  %v83_v27 = vand.u32 2147483647, %v140_v9 }
  0x33   :  { %141 = vlog2.f32 %v68_v11  ;;  %v72_v20 = vadd.f32 1.0, %v71_v16  ;;  %vm75_vm0 = vcmp.lt.f32.partialorder %v74_v23, 0.0004427343 }
  0x34   :  { %143 = vlog2.f32 %v77_v13  ;;  %v81_v24 = vadd.f32 1.0, %v80_v18  ;;  %vm84_vm1 = vcmp.lt.f32.partialorder %v83_v27, 0.0004427343 }
  0x35   :  { %v73_v28 = vmul.f32 %v138_v8, %v72_v20 }
  0x36   :  { %v82_v31 = vmul.f32 %v140_v9, %v81_v24 }
  0x40   :  { %v142_v29 = vpop.eup %141 }
  0x41   :  { %v144_v32 = vpop.eup %143  ;;  %v70_v34 = vmul.f32 0.6931472, %v142_v29 }
  0x42   :  { %v79_v35 = vmul.f32 0.6931472, %v144_v32 }
  0x43   :  { %v76_v36 = vsel %vm75_vm0, %v73_v28, %v70_v34 }
  0x44   :  { %v85_v37 = vsel %vm84_vm1, %v82_v31, %v79_v35  ;;  %v86_v38 = vadd.f32 %v76_v36, %v58_v30 }
  0x45   :  { %v87_v39 = vadd.f32 %v85_v37, %v59_v33 }
  0x47   :  { %v101_v40 = vadd.f32 %v87_v39, %v86_v38 }
  0x49   :  { %102 = vadd.xlane.f32.xlu0 %v101_v40 }
  0xd2   :  { %v103_v41 = vpop.xlane.xlu0 %102 }
  0xd3   :  { %v104_v42 = vrot.slane %v103_v41, 4 }
  0xd5   :  { %v105_v43 = vadd.f32 %v104_v42, %v103_v41 }
  0xd7   :  { %v106_v44 = vrot.slane %v105_v43, 2 }
  0xd9   :  { %v107_v45 = vadd.f32 %v106_v44, %v105_v43 }
  0xdb   :  { %v108_v46 = vrot.slane %v107_v45, 1 }
  0xdd   :  { %v109_v47 = vadd.f32 %v108_v46, %v107_v45 }
  0xdf   :  { %130 = vpush %v109_v47 }
 0x110   :  { %s131_s0 = spop %130 }
 0x111   :  { %112 = sst [smem:[#allocation8]] %s131_s0 }
 0x112   :  { %120 = dma.smem_to_hbm %s203_s1, 16, %s230_s2, [#allocation5]  }
 0x113   :  { %197 = dma.done.wait [#allocation5], 16  }
 0x114   :  { %198 = vsyncadd [#allocation5], 4294967280 }
 0x115   :  { %124 = sfence }
 0x116   :  { %125 = vsyncpa [#allocation4], 1 }
 0x117   :  { %126 = vsyncpa [#allocation7], 1 }
 0x118   :  { %127 = vsyncpa [#allocation5], 1 }

</bundles_post_ra>
